<compile_context>
chip_gen: v6e
topology: v6e:2x2x1
jax: 0.10.0
libtpu: 0.0.40
codegen_flags: <defaults>
</compile_context>

<pallas_src>
import functools

import numpy as np
import jax
import jax.numpy as jnp
from jax.experimental import pallas as pl
from jax.experimental.pallas import tpu as pltpu


def _round_up(x, m):
    return (x + m - 1) // m * m


def _pad2(a, rows, cols):
    return jnp.pad(a, ((0, rows - a.shape[0]), (0, cols - a.shape[1])))


# ---------------------------------------------------------------------------
# Fused kernel: whole MetaNet forward for one row tile.
#   refs = (x_ref, w0_ref, [wstk_ref], t_ref, w_last_ref, b_last_ref, out_ref)
#   w* are bf16 (scale-folded), t/b are f32 shifts, accumulation is f32.
# ---------------------------------------------------------------------------
def _metanet_kernel(*refs, n_hidden):
    x_ref = refs[0]
    out_ref = refs[-1]
    idx = 1
    w0_ref = refs[idx]; idx += 1
    wstk_ref = None
    if n_hidden > 1:
        wstk_ref = refs[idx]; idx += 1
    t_ref = refs[idx]; idx += 1
    w_last_ref, b_last_ref = refs[idx], refs[idx + 1]

    # First hidden block: Linear (bf16 MXU, f32 acc) + folded-BN shift + ReLU.
    h = jnp.dot(x_ref[...].astype(jnp.bfloat16), w0_ref[...],
                preferred_element_type=jnp.float32)
    h = jnp.maximum(h + t_ref[0:1, :], 0.0)
    # TODO(synk): Dropout(0.1) after the first block is eval-mode identity here
    # (no RNG mask); training-mode parity is not reproduced.

    for l in range(1, n_hidden):
        h = jnp.dot(h.astype(jnp.bfloat16), wstk_ref[l - 1],
                    preferred_element_type=jnp.float32)
        h = jnp.maximum(h + t_ref[l:l + 1, :], 0.0)

    out_ref[...] = (
        jnp.dot(h.astype(jnp.bfloat16), w_last_ref[...],
                preferred_element_type=jnp.float32) + b_last_ref[...]
    ).astype(out_ref.dtype)


# ---------------------------------------------------------------------------
# Wrapper: fold BN, fold scale into weights, stack params, call the kernel.
# ---------------------------------------------------------------------------
def metanet_forward(params, x, block_m=512):
    eps = 1e-5
    hidden = params['hidden']
    w_last, b_last = params['last']
    n_hidden = len(hidden)
    assert n_hidden >= 1

    M, cin0 = x.shape
    ncoefs = w_last.shape[0]

    # Hidden widths padded to one common lane-dense width so the hidden
    # weights can be stacked into a single ref. Padding is exact (zeros).
    hdims = [w.shape[0] for (w, _, _) in hidden]
    phid = _round_up(max(hdims), 128)

    # --- fold BN (eval mode) + bias into scale/shift, fold scale into W -----
    # TODO(synk): BatchNorm1d uses folded running stats (eval mode only);
    # training-mode batch statistics are not reproduced.
    w0 = None
    wstk = []
    t_rows = []
    for i, (w, b, (gamma, beta, mean, var)) in enumerate(hidden):
        s = gamma / jnp.sqrt(var + eps)                     # (cout,)
        t = (b - mean) * s + beta                           # (cout,)
        wf = (w.astype(jnp.float32) * s[:, None]).T         # (cin, cout), s folded
        if i == 0:
            w0 = _pad2(wf, cin0, phid).astype(jnp.bfloat16)
        else:
            wstk.append(_pad2(wf, phid, phid).astype(jnp.bfloat16))
        t_rows.append(jnp.pad(t.astype(jnp.float32), (0, phid - t.shape[0])))
    t_stack = jnp.stack(t_rows)                              # (n_hidden, phid) f32

    wl = _pad2(w_last.T.astype(jnp.float32), phid, ncoefs).astype(jnp.bfloat16)
    bl = b_last.astype(jnp.float32).reshape(1, ncoefs)

    # --- row tiling: big tiles, >=2 grid steps when M permits (v7x megacore) -
    if M <= 8:
        tm = M                                   # single full-extent row block
    else:
        tm = min(block_m, max(8, _round_up(pl.cdiv(M, 2), 8)))
    grid = (pl.cdiv(M, tm),)

    # --- inputs & specs ------------------------------------------------------
    inputs = [x.astype(jnp.float32), w0]
    in_specs = [
        pl.BlockSpec((tm, cin0), lambda i: (i, 0)),          # x rows, true 131 cols
        pl.BlockSpec((cin0, phid), lambda i: (0, 0)),         # first weight
    ]
    if n_hidden > 1:
        inputs.append(jnp.stack(wstk))                        # (n_hidden-1, phid, phid)
        in_specs.append(pl.BlockSpec((n_hidden - 1, phid, phid),
                                     lambda i: (0, 0, 0)))
    inputs += [t_stack, wl, bl]
    in_specs += [
        pl.BlockSpec((n_hidden, phid), lambda i: (0, 0)),     # stacked BN shifts
        pl.BlockSpec((phid, ncoefs), lambda i: (0, 0)),       # last weight
        pl.BlockSpec((1, ncoefs), lambda i: (0, 0)),          # last bias
    ]

    # --- cost estimate (true dims) -------------------------------------------
    dims = [cin0] + hdims + [ncoefs]
    flops = 2 * M * sum(dims[i] * dims[i + 1] for i in range(len(dims) - 1))
    bytes_accessed = int(
        M * cin0 * 4 + M * ncoefs * 4
        + sum(int(np.prod(a.shape)) * a.dtype.itemsize for a in inputs[1:]))
    cost = pl.CostEstimate(flops=int(flops), transcendentals=0,
                           bytes_accessed=bytes_accessed)

    out = pl.pallas_call(
        functools.partial(_metanet_kernel, n_hidden=n_hidden),
        out_shape=jax.ShapeDtypeStruct((M, ncoefs), jnp.float32),
        grid_spec=pltpu.PrefetchScalarGridSpec(
            num_scalar_prefetch=0,
            grid=grid,
            in_specs=in_specs,
            out_specs=pl.BlockSpec((tm, ncoefs), lambda i: (i, 0)),
        ),
        compiler_params=pltpu.CompilerParams(
            dimension_semantics=("parallel",),
            vmem_limit_bytes=32 * 1024 * 1024,
        ),
        cost_estimate=cost,
    )(*inputs)

    return out


# ---------------------------------------------------------------------------
# Deterministic parameter init (matches MetaNet(m, d) __init__ shapes)
# ---------------------------------------------------------------------------
def init_params(key, m, d):
    ncoefs, nmetas = 18, 3
    channels = np.logspace(np.log10(ncoefs), np.log10(d),
                           m + 1).astype('int')[::-1].copy()
    channels[0] = d + nmetas
    channels[-1] = ncoefs

    keys = iter(jax.random.split(key, 8 * m + 8))
    nk = lambda: next(keys)

    hidden = []
    for i in range(m - 1):
        cin, cout = int(channels[i]), int(channels[i + 1])
        w = jax.random.normal(nk(), (cout, cin), jnp.float32) / np.sqrt(cin)
        b = 0.01 * jax.random.normal(nk(), (cout,), jnp.float32)
        bn = (1.0 + 0.1 * jax.random.normal(nk(), (cout,), jnp.float32),  # gamma
              0.1 * jax.random.normal(nk(), (cout,), jnp.float32),        # beta
              0.1 * jax.random.normal(nk(), (cout,), jnp.float32),        # mean
              jax.random.uniform(nk(), (cout,), jnp.float32, 0.5, 1.5))   # var
        hidden.append((w, b, bn))

    cin, cout = int(channels[-2]), int(channels[-1])
    w_last = jax.random.normal(nk(), (cout, cin), jnp.float32) / np.sqrt(cin)
    b_last = 0.01 * jax.random.normal(nk(), (cout,), jnp.float32)
    return {'hidden': hidden, 'last': (w_last, b_last)}


if __name__ == "__main__":
    key = jax.random.PRNGKey(0)
    kp, kx = jax.random.split(key)

    m, d = 4, 128                      # small MetaNet: channels 131->78->48->29->18
    params = init_params(kp, m, d)

    batch = 2
    x = jax.random.normal(kx, (batch, d + 3), jnp.float32)   # 1xd repr + 3 metas

    fwd = jax.jit(metanet_forward)
    out = fwd(params, x)
    jax.block_until_ready(out)

    assert out.shape == (batch, 18) and out.dtype == jnp.float32
    assert bool(jnp.all(jnp.isfinite(out)))
    print("KERNEL_OK")
</pallas_src>

<mosaic_0001>
module attributes {stable_mosaic.version = 11 : i64} {
  func.func @_metanet_kernel(%arg0: i32, %arg1: memref<2x131xf32, #tpu.memory_space<vmem>>, %arg2: memref<131x128xbf16, #tpu.memory_space<vmem>>, %arg3: memref<2x128x128xbf16, #tpu.memory_space<vmem>>, %arg4: memref<3x128xf32, #tpu.memory_space<vmem>>, %arg5: memref<128x18xbf16, #tpu.memory_space<vmem>>, %arg6: memref<1x18xf32, #tpu.memory_space<vmem>>, %arg7: memref<2x18xf32, #tpu.memory_space<vmem>>) attributes {dimension_semantics = [#tpu.dimension_semantics<parallel>], iteration_bounds = array<i64: 1>, scalar_prefetch = 0 : i64, scratch_operands = 0 : i64, tpu.core_type = #tpu.core_type<tc>, window_params = [{transform_indices = @transform_0, window_bounds = array<i64: 2, 131>}, {pipeline_mode = #tpu.pipeline_mode<synchronous>, transform_indices = @transform_1, window_bounds = array<i64: 131, 128>}, {pipeline_mode = #tpu.pipeline_mode<synchronous>, transform_indices = @transform_2, window_bounds = array<i64: 2, 128, 128>}, {pipeline_mode = #tpu.pipeline_mode<synchronous>, transform_indices = @transform_3, window_bounds = array<i64: 3, 128>}, {pipeline_mode = #tpu.pipeline_mode<synchronous>, transform_indices = @transform_4, window_bounds = array<i64: 128, 18>}, {pipeline_mode = #tpu.pipeline_mode<synchronous>, transform_indices = @transform_5, window_bounds = array<i64: 1, 18>}, {transform_indices = @transform_6, window_bounds = array<i64: 2, 18>}]} {
    %c0 = arith.constant 0 : index
    %c0_0 = arith.constant 0 : index
    %0 = vector.load %arg1[%c0, %c0_0] : memref<2x131xf32, #tpu.memory_space<vmem>>, vector<2x131xf32>
    %1 = arith.truncf %0 : vector<2x131xf32> to vector<2x131xbf16>
    %c0_1 = arith.constant 0 : index
    %c0_2 = arith.constant 0 : index
    %2 = vector.load %arg2[%c0_1, %c0_2] : memref<131x128xbf16, #tpu.memory_space<vmem>>, vector<131x128xbf16>
    %cst = arith.constant dense<0.000000e+00> : vector<2x128xf32>
    %3 = tpu.matmul %1, %2, %cst {dimension_numbers = #tpu.dot_dimension_numbers<[1], [0], [0], [1], [0, 0, 1, 1], [], []>} : vector<2x131xbf16>, vector<131x128xbf16>, vector<2x128xf32> -> vector<2x128xf32>
    %c0_3 = arith.constant 0 : index
    %c0_4 = arith.constant 0 : index
    %4 = vector.load %arg4[%c0_3, %c0_4] : memref<3x128xf32, #tpu.memory_space<vmem>>, vector<1x128xf32>
    %5 = vector.broadcast %4 : vector<1x128xf32> to vector<2x128xf32>
    %6 = arith.addf %3, %5 : vector<2x128xf32>
    %cst_5 = arith.constant 0.000000e+00 : f32
    %7 = vector.broadcast %cst_5 : f32 to vector<2x128xf32>
    %8 = arith.maximumf %6, %7 : vector<2x128xf32>
    %9 = arith.truncf %8 : vector<2x128xf32> to vector<2x128xbf16>
    %c0_6 = arith.constant 0 : index
    %c0_7 = arith.constant 0 : index
    %c0_8 = arith.constant 0 : index
    %10 = vector.load %arg3[%c0_6, %c0_7, %c0_8] : memref<2x128x128xbf16, #tpu.memory_space<vmem>>, vector<1x128x128xbf16>
    %11 = vector.shape_cast %10 : vector<1x128x128xbf16> to vector<128x128xbf16>
    %cst_9 = arith.constant dense<0.000000e+00> : vector<2x128xf32>
    %12 = tpu.matmul %9, %11, %cst_9 {dimension_numbers = #tpu.dot_dimension_numbers<[1], [0], [0], [1], [0, 0, 1, 1], [], []>} : vector<2x128xbf16>, vector<128x128xbf16>, vector<2x128xf32> -> vector<2x128xf32>
    %c1 = arith.constant 1 : index
    %c0_10 = arith.constant 0 : index
    %13 = vector.load %arg4[%c1, %c0_10] : memref<3x128xf32, #tpu.memory_space<vmem>>, vector<1x128xf32>
    %14 = vector.broadcast %13 : vector<1x128xf32> to vector<2x128xf32>
    %15 = arith.addf %12, %14 : vector<2x128xf32>
    %cst_11 = arith.constant 0.000000e+00 : f32
    %16 = vector.broadcast %cst_11 : f32 to vector<2x128xf32>
    %17 = arith.maximumf %15, %16 : vector<2x128xf32>
    %18 = arith.truncf %17 : vector<2x128xf32> to vector<2x128xbf16>
    %c1_12 = arith.constant 1 : index
    %c0_13 = arith.constant 0 : index
    %c0_14 = arith.constant 0 : index
    %19 = vector.load %arg3[%c1_12, %c0_13, %c0_14] : memref<2x128x128xbf16, #tpu.memory_space<vmem>>, vector<1x128x128xbf16>
    %20 = vector.shape_cast %19 : vector<1x128x128xbf16> to vector<128x128xbf16>
    %cst_15 = arith.constant dense<0.000000e+00> : vector<2x128xf32>
    %21 = tpu.matmul %18, %20, %cst_15 {dimension_numbers = #tpu.dot_dimension_numbers<[1], [0], [0], [1], [0, 0, 1, 1], [], []>} : vector<2x128xbf16>, vector<128x128xbf16>, vector<2x128xf32> -> vector<2x128xf32>
    %c2 = arith.constant 2 : index
    %c0_16 = arith.constant 0 : index
    %22 = vector.load %arg4[%c2, %c0_16] : memref<3x128xf32, #tpu.memory_space<vmem>>, vector<1x128xf32>
    %23 = vector.broadcast %22 : vector<1x128xf32> to vector<2x128xf32>
    %24 = arith.addf %21, %23 : vector<2x128xf32>
    %cst_17 = arith.constant 0.000000e+00 : f32
    %25 = vector.broadcast %cst_17 : f32 to vector<2x128xf32>
    %26 = arith.maximumf %24, %25 : vector<2x128xf32>
    %27 = arith.truncf %26 : vector<2x128xf32> to vector<2x128xbf16>
    %c0_18 = arith.constant 0 : index
    %c0_19 = arith.constant 0 : index
    %28 = vector.load %arg5[%c0_18, %c0_19] : memref<128x18xbf16, #tpu.memory_space<vmem>>, vector<128x18xbf16>
    %cst_20 = arith.constant dense<0.000000e+00> : vector<2x18xf32>
    %29 = tpu.matmul %27, %28, %cst_20 {dimension_numbers = #tpu.dot_dimension_numbers<[1], [0], [0], [1], [0, 0, 1, 1], [], []>} : vector<2x128xbf16>, vector<128x18xbf16>, vector<2x18xf32> -> vector<2x18xf32>
    %c0_21 = arith.constant 0 : index
    %c0_22 = arith.constant 0 : index
    %30 = vector.load %arg6[%c0_21, %c0_22] : memref<1x18xf32, #tpu.memory_space<vmem>>, vector<1x18xf32>
    %31 = vector.broadcast %30 : vector<1x18xf32> to vector<2x18xf32>
    %32 = arith.addf %29, %31 : vector<2x18xf32>
    %c0_23 = arith.constant 0 : index
    %c0_24 = arith.constant 0 : index
    %33 = vector.load %arg7[%c0_23, %c0_24] : memref<2x18xf32, #tpu.memory_space<vmem>>, vector<2x18xf32>
    tpu.vector_store %arg7[%c0_23, %c0_24], %32 {strides = array<i32>} : memref<2x18xf32, #tpu.memory_space<vmem>>, vector<2x18xf32>,
    return
  }
  func.func @transform_0(%arg0: i32) -> (i32, i32) {
    %c0_i32 = arith.constant 0 : i32
    %c0_i32_0 = arith.constant 0 : i32
    return %arg0, %c0_i32 : i32, i32
  }
  func.func @transform_1(%arg0: i32) -> (i32, i32) {
    %c0_i32 = arith.constant 0 : i32
    %c0_i32_0 = arith.constant 0 : i32
    %c0_i32_1 = arith.constant 0 : i32
    return %c0_i32, %c0_i32_0 : i32, i32
  }
  func.func @transform_2(%arg0: i32) -> (i32, i32, i32) {
    %c0_i32 = arith.constant 0 : i32
    %c0_i32_0 = arith.constant 0 : i32
    %c0_i32_1 = arith.constant 0 : i32
    %c0_i32_2 = arith.constant 0 : i32
    return %c0_i32, %c0_i32_0, %c0_i32_1 : i32, i32, i32
  }
  func.func @transform_3(%arg0: i32) -> (i32, i32) {
    %c0_i32 = arith.constant 0 : i32
    %c0_i32_0 = arith.constant 0 : i32
    %c0_i32_1 = arith.constant 0 : i32
    return %c0_i32, %c0_i32_0 : i32, i32
  }
  func.func @transform_4(%arg0: i32) -> (i32, i32) {
    %c0_i32 = arith.constant 0 : i32
    %c0_i32_0 = arith.constant 0 : i32
    %c0_i32_1 = arith.constant 0 : i32
    return %c0_i32, %c0_i32_0 : i32, i32
  }
  func.func @transform_5(%arg0: i32) -> (i32, i32) {
    %c0_i32 = arith.constant 0 : i32
    %c0_i32_0 = arith.constant 0 : i32
    %c0_i32_1 = arith.constant 0 : i32
    return %c0_i32, %c0_i32_0 : i32, i32
  }
  func.func @transform_6(%arg0: i32) -> (i32, i32) {
    %c0_i32 = arith.constant 0 : i32
    %c0_i32_0 = arith.constant 0 : i32
    return %arg0, %c0_i32 : i32, i32
  }
}

</mosaic_0001>

<bundles_post_ra>
// kernel: metanet_forward.1
= control target key start
LH: loop header
LB: loop body
LE: loop exit
PB: predicated region body
PF: predicated region fallthrough
CT: control target
= control target key end

     0   :  { %v717_v1 = vmov 0   ;;  %vm116_vm0 = vcmask 1040384   ;;  %v718_v5 = vmov 0.0   ;;  %vm112_vm1 = vcmask 23552   ;;  %s901_s0 = inlined_call_operand.vmem [shape: f32[2,131], index: 0, kind: input, shape index: {}]   ;;  %s902_s1 = inlined_call_operand.vmem [shape: bf16[131,128], index: 1, kind: input, shape index: {}]   ;;  %s903_s2 = inlined_call_operand.vmem [shape: bf16[2,128,128], index: 2, kind: input, shape index: {}]   ;;  %s904_s3 = inlined_call_operand.vmem [shape: f32[3,128], index: 3, kind: input, shape index: {}]   ;;  %s905_s4 = inlined_call_operand.vmem [shape: bf16[128,18], index: 4, kind: input, shape index: {}]   ;;  %s906_s5 = inlined_call_operand.vmem [shape: f32[1,18], index: 5, kind: input, shape index: {}]   ;;  %s907_s6 = inlined_call_operand.hbm [shape: f32[2,18], index: 6, kind: output, shape index: {}]  }
   0x1   :  { %v662_v0 = vld [vmem:[%s902_s1 + $0x38] sm:$0xff]   ;;  %123 = vmatprep.subr.bf16.mxu0 %v717_v1  ;;  %v663_v2 = vld [vmem:[%s902_s1 + $0x30] sm:$0xff]   ;;  %v664_v3 = vld [vmem:[%s902_s1 + $0x28] sm:$0xff]   ;;  %597 = vmatprep.subr.bf16.mxu1 %v718_v5  ;;  %vm117_vm2 = vcmask 1041408   ;;  %v719_v10 = vmov 65535  }
   0x2   :  { %124 = vmatpush1.bf16.msra.mxu0 %v662_v0  ;;  %v665_v4 = vld [vmem:[%s902_s1 + $0x20] sm:$0xff]   ;;  %v671_v6 = vld [vmem:[%s903_s2 + $0x38] sm:$0xff]   ;;  %v672_v9 = vld [vmem:[%s903_s2 + $0x30] sm:$0xff]   ;;  %v118_v11 = vsel %vm116_vm0, 4294967295, %v719_v10 }
   0x3   :  { %125 = vmatprep.subr.bf16.mxu0 %v717_v1  ;;  %v515_v7 = vld.sshfl [vmem:[%s901_s0] sm:$0x33 pattern:$0x76325410]  ;;  %598 = vmatpush3.bf16.msra.mxu1 %v671_v6  ;;  %v666_v13 = vld [vmem:[%s902_s1 + $0x18] sm:$0xff]   ;;  %v119_v14 = vsel %vm117_vm2, %v118_v11, 0 }
   0x4   :  { %v34_v8 = vcombine.high %v515_v7, %v515_v7  ;;  %599 = vmatprep.subr.bf16.mxu1 %v718_v5  ;;  %v673_v15 = vld [vmem:[%s903_s2 + $0x28] sm:$0xff]   ;;  %v667_v16 = vld [vmem:[%s902_s1 + $0x10] sm:$0xff]   ;;  %v674_v17 = vld [vmem:[%s903_s2 + $0x20] sm:$0xff]  }
   0x5   :  { %v668_v18 = vld [vmem:[%s902_s1 + $0x8] sm:$0xff]   ;;  %v675_v19 = vld [vmem:[%s903_s2 + $0x18] sm:$0xff]   ;;  %v669_v20 = vld [vmem:[%s902_s1] sm:$0xff]  }
   0x6   :  { %126 = vmatpush1.bf16.msra.mxu0 %v663_v2  ;;  %v38_v12 = vpack.c.bf16 %v34_v8, %v34_v8  ;;  %v670_v21 = vld [vmem:[%s902_s1 + $0x40] ss:$0 sps:$4 sm:$0x33]   ;;  %v676_v22 = vld [vmem:[%s903_s2 + $0x10] sm:$0xff]  }
   0x7   :  { %127 = vmatprep.subr.bf16.mxu0 %v717_v1  ;;  %600 = vmatpush3.bf16.msra.mxu1 %v672_v9 }
   0x8   :  { %526 = vmatprep.mubr.msk.bf16.mxu0 %vm112_vm1, %v38_v12  ;;  %601 = vmatprep.subr.bf16.mxu1 %v718_v5 }
   0xa   :  { %128 = vmatpush1.bf16.msra.mxu0 %v664_v3 }
   0xb   :  { %129 = vmatprep.subr.bf16.mxu0 %v717_v1  ;;  %602 = vmatpush3.bf16.msra.mxu1 %v673_v15 }
   0xc   :  { %603 = vmatprep.subr.bf16.mxu1 %v718_v5 }
   0xe   :  { %130 = vmatpush1.bf16.msra.mxu0 %v665_v4 }
   0xf   :  { %131 = vmatprep.subr.bf16.mxu0 %v717_v1  ;;  %604 = vmatpush3.bf16.msra.mxu1 %v674_v17 }
  0x10   :  { %605 = vmatprep.subr.bf16.mxu1 %v718_v5 }
  0x12   :  { %132 = vmatpush1.bf16.msra.mxu0 %v666_v13 }
  0x13   :  { %133 = vmatprep.subr.bf16.mxu0 %v717_v1  ;;  %606 = vmatpush3.bf16.msra.mxu1 %v675_v19 }
  0x16   :  { %134 = vmatpush1.bf16.msra.mxu0 %v667_v16 }
  0x17   :  { %135 = vmatprep.subr.bf16.mxu0 %v717_v1 }
  0x1a   :  { %136 = vmatpush1.bf16.msra.mxu0 %v668_v18 }
  0x1b   :  { %137 = vmatprep.subr.bf16.mxu0 %v717_v1 }
  0x1c   :  { %11 = vsyncpa [#allocation3], 0  ;;  %607 = vmatprep.subr.bf16.mxu1 %v718_v5  ;;  %v121_v23 = vand.u32 %v670_v21, %v119_v14  ;;  %v37_v24 = vpack.c.bf16 %v515_v7, %v515_v7  ;;  %v677_v25 = vld [vmem:[%s903_s2 + $0x8] sm:$0xff]   ;;  %v678_v26 = vld [vmem:[%s903_s2] sm:$0xff]   ;;  %vm720_vm3 = vmmov 0   ;;  %s721_s19 = smov [#allocation2]  }
  0x1d   :  { %608 = vmatpush3.bf16.msra.mxu1 %v676_v22  ;;  %613 = vmatprep.mubr.msk.bf16.mxu1 %vm720_vm3, %v718_v5  ;;  %v516_v27 = vld [vmem:[%s904_s3] ss:$0 sm:$0xff]  ;;  %v679_v33 = vld [vmem:[%s903_s2 + $0x78] sm:$0xff]   ;;  %v680_v36 = vld [vmem:[%s903_s2 + $0x70] sm:$0xff]   ;;  %s507_s20 = sshll.u32 %s721_s19, 4  ;;  %vm499_vm4 = vcmask 140288   ;;  %s508_s20 = int_to_ptr.vmem [resolvable:$true] %s507_s20 }
  0x1e   :  { %138 = vmatpush1.bf16.msra.mxu0 %v669_v20  ;;  %609 = vmatprep.subr.bf16.mxu1 %v718_v5  ;;  %v681_v37 = vld [vmem:[%s903_s2 + $0x68] sm:$0xff]   ;;  %v682_v38 = vld [vmem:[%s903_s2 + $0x60] sm:$0xff]   ;;  %v683_v39 = vld [vmem:[%s903_s2 + $0x58] sm:$0xff]   ;;  %p700_p1 = scmp.lt.s32.totalorder %s508_s20, %s508_s20 }
  0x1f   :  { %153 = vmatprep.subr.bf16.mxu0 %v717_v1  ;;  %v684_v40 = vld [vmem:[%s903_s2 + $0x50] sm:$0xff]   ;;  %v685_v41 = vld [vmem:[%s903_s2 + $0x48] sm:$0xff]   ;;  %v686_v42 = vld [vmem:[%s903_s2 + $0x40] sm:$0xff]  }
  0x20   :  { %v687_v43 = vld [vmem:[%s905_s4 + $0x38] sm:$0xff]   ;;  %v688_v44 = vld [vmem:[%s905_s4 + $0x30] sm:$0xff]   ;;  %v689_v45 = vld [vmem:[%s905_s4 + $0x28] sm:$0xff]  }
  0x21   :  { %610 = vmatpush3.bf16.msra.mxu1 %v677_v25  ;;  %v690_v46 = vld [vmem:[%s905_s4 + $0x20] sm:$0xff]   ;;  %v691_v47 = vld [vmem:[%s905_s4 + $0x18] sm:$0xff]   ;;  %v692_v48 = vld [vmem:[%s905_s4 + $0x10] sm:$0xff]  }
  0x22   :  { %154 = vmatpush2.bf16.msra.mxu0 %v121_v23  ;;  %611 = vmatprep.subr.bf16.mxu1 %v718_v5  ;;  %v527_v49 = vld [vmem:[%s904_s3 + $0x1] ss:$0 sm:$0xff]  ;;  %v693_v57 = vld [vmem:[%s905_s4 + $0x8] sm:$0xff]   ;;  %v552_v59 = vld [vmem:[%s904_s3 + $0x2] ss:$0 sm:$0xff]  ;;  %s695_s3 = scalar_lea.vmem %s508_s20, 32 }
  0x23   :  { %637 = vmatprep.subr.bf16.mxu0 %v718_v5  ;;  %v694_v58 = vld [vmem:[%s905_s4] sm:$0xff]   ;;  %p696_p0 = scmp.ne.s32.totalorder %s508_s20, %s695_s3  ;;  %p701_p2 = scmp.lt.s32.totalorder %s695_s3, %s695_s3 }
  0x24   :  { %v561_v3 = vld [vmem:[%s906_s5] ss:$0 sm:$0xff] }
  0x25   :  { %156 = vmatmul.mubr.bf16.vlgmr.msra.gmra.mxu0 %v37_v24  ;;  %612 = vmatpush3.bf16.msra.mxu1 %v678_v26  ;;  %p702_p3 = por %p701_p2, %p700_p1 }
  0x26   :  { %617 = vmatprep.subr.bf16.mxu1 %v718_v5  ;;  %653 = vmatprep.mubr.msk.bf16.mxu0 %vm720_vm3, %v718_v5 }
  0x27   :  { %638 = vmatpush3.bf16.msra.mxu0 %v687_v43  ;;  %p703_p4 = pnand %p702_p3, %p696_p0 }
  0x28   :  { %639 = vmatprep.subr.bf16.mxu0 %v718_v5 }
  0x2b   :  { %640 = vmatpush3.bf16.msra.mxu0 %v688_v44 }
  0x2c   :  { %641 = vmatprep.subr.bf16.mxu0 %v718_v5 }
  0x2f   :  { %642 = vmatpush3.bf16.msra.mxu0 %v689_v45 }
  0x30   :  { %643 = vmatprep.subr.bf16.mxu0 %v718_v5 }
  0x33   :  { %644 = vmatpush3.bf16.msra.mxu0 %v690_v46 }
  0x34   :  { %645 = vmatprep.subr.bf16.mxu0 %v718_v5 }
  0x37   :  { %646 = vmatpush3.bf16.msra.mxu0 %v691_v47 }
  0x38   :  { %647 = vmatprep.subr.bf16.mxu0 %v718_v5 }
  0x3b   :  { %648 = vmatpush3.bf16.msra.mxu0 %v692_v48 }
  0x3c   :  { %649 = vmatprep.subr.bf16.mxu0 %v718_v5 }
  0x3f   :  { %650 = vmatpush3.bf16.msra.mxu0 %v693_v57 }
  0x40   :  { %651 = vmatprep.subr.bf16.mxu0 %v718_v5 }
  0x43   :  { %652 = vmatpush3.bf16.msra.mxu0 %v694_v58 }
  0xe5   :  { %v157_v28 = vpop.f32.mrf.mxu0 }
  0xe6   :  { %v158_v29 = vadd.f32 %v516_v27, %v157_v28 }
  0xe7   :  { %v159_v30 = vpop.f32.mrf.mxu0 }
  0xe8   :  { %v163_v31 = vmax.f32 %v158_v29, 0.0 }
  0xe9   :  { %v160_v32 = vpop.f32.mrf.mxu0 }
  0xea   :  { %v164_v34 = vpack.c.bf16 %v163_v31, %v163_v31 }
  0xeb   :  { %v161_v35 = vpop.f32.mrf.mxu0 }
  0xec   :  { %614 = vmatmul.mubr.bf16.vlgmr.msra.gmra.mxu1 %v164_v34 }
  0xed   :  { %618 = vmatpush3.bf16.msra.mxu1 %v679_v33  ;;  %633 = vmatprep.mubr.msk.bf16.mxu1 %vm720_vm3, %v718_v5 }
  0xee   :  { %619 = vmatprep.subr.bf16.mxu1 %v718_v5 }
  0xf1   :  { %620 = vmatpush3.bf16.msra.mxu1 %v680_v36 }
  0xf2   :  { %621 = vmatprep.subr.bf16.mxu1 %v718_v5 }
  0xf5   :  { %622 = vmatpush3.bf16.msra.mxu1 %v681_v37 }
  0xf6   :  { %623 = vmatprep.subr.bf16.mxu1 %v718_v5 }
  0xf9   :  { %624 = vmatpush3.bf16.msra.mxu1 %v682_v38 }
  0xfa   :  { %625 = vmatprep.subr.bf16.mxu1 %v718_v5 }
  0xfd   :  { %626 = vmatpush3.bf16.msra.mxu1 %v683_v39 }
  0xfe   :  { %627 = vmatprep.subr.bf16.mxu1 %v718_v5 }
 0x101   :  { %628 = vmatpush3.bf16.msra.mxu1 %v684_v40 }
 0x102   :  { %629 = vmatprep.subr.bf16.mxu1 %v718_v5 }
 0x105   :  { %630 = vmatpush3.bf16.msra.mxu1 %v685_v41 }
 0x106   :  { %631 = vmatprep.subr.bf16.mxu1 %v718_v5 }
 0x109   :  { %632 = vmatpush3.bf16.msra.mxu1 %v686_v42 }
 0x1ac   :  { %v268_v50 = vpop.f32.mrf.mxu1 }
 0x1ad   :  { %v269_v51 = vadd.f32 %v527_v49, %v268_v50 }
 0x1ae   :  { %v615_v52 = vpop.f32.mrf.mxu1 }
 0x1af   :  { %v274_v53 = vmax.f32 %v269_v51, 0.0 }
 0x1b0   :  { %v271_v54 = vpop.f32.mrf.mxu1 }
 0x1b1   :  { %v275_v55 = vpack.c.bf16 %v274_v53, %v274_v53 }
 0x1b2   :  { %v616_v56 = vpop.f32.mrf.mxu1 }
 0x1b3   :  { %634 = vmatmul.mubr.bf16.vlgmr.msra.gmra.mxu1 %v275_v55 }
 0x273   :  { %v380_v60 = vpop.f32.mrf.mxu1 }
 0x274   :  { %v381_v61 = vadd.f32 %v552_v59, %v380_v60 }
 0x275   :  { %v635_v62 = vpop.f32.mrf.mxu1 }
 0x276   :  { %v386_v63 = vmax.f32 %v381_v61, 0.0 }
 0x277   :  { %v383_v0 = vpop.f32.mrf.mxu1 }
 0x278   :  { %v387_v1 = vpack.c.bf16 %v386_v63, %v386_v63 }
 0x279   :  { %v636_v2 = vpop.f32.mrf.mxu1 }
 0x27a   :  { %654 = vmatmul.mubr.bf16.vlgmr.msra.gmra.mxu0 %v387_v1 }
 0x33a   :  { %v493_v4 = vpop.f32.mrf.mxu0 }
 0x33b   :  { %v494_v5 = vadd.f32 %v561_v3, %v493_v4 }
 0x33c   :  { %v655_v6 = vpop.f32.mrf.mxu0 }
 0x33d   :  { %500 = vst.msk [vmem:[#allocation2] sm:$0x3] %vm499_vm4, %v494_v5 }
 0x33e   :  { %v496_v7 = vpop.f32.mrf.mxu0 }
 0x33f   :  { %706 = shalt.err (!%p703_p4)
}
 0x340   :  { %510 = dma.vmem_to_hbm [thread:$0]  %s508_s20, 32, %s907_s6, [#allocation3]   ;;  %v656_v8 = vpop.f32.mrf.mxu0 }
 0x341   :  { %715 = dma.done.wait [#allocation3], 32  }
 0x342   :  { %716 = vsyncadd [#allocation3], 4294967264 }
 0x343   :  { %514 = vsyncpa [#allocation3], 1 }

</bundles_post_ra>
